<compile_context>
chip_gen: v7x
topology: tpu7x:2x2x1
jax: 0.10.0
libtpu: 0.0.40
codegen_flags: <defaults>
</compile_context>

<pallas_src>
import math

import jax
import jax.numpy as jnp
from jax import lax
from jax.experimental import pallas as pl
from jax.experimental.pallas import tpu as pltpu


def _round_up(v, m):
    return ((v + m - 1) // m) * m


_TM_DEFAULT = 512
_TN_DEFAULT = 512
_TK_DEFAULT = 2048


# ---------------------------------------------------------------------------
# Generation-aware VMEM budget (v5e/v6e: 128 MiB physical, v7x: 64 MiB).
# ---------------------------------------------------------------------------
def _vmem_limit_bytes():
    try:
        cap = pltpu.get_tpu_info().vmem_capacity_bytes
    except Exception:
        cap = 64 * 1024 * 1024          # conservative (v7x-sized) fallback
    return int(min(cap * 3 // 4, 100 * 1024 * 1024))


# ---------------------------------------------------------------------------
# Kernels
# ---------------------------------------------------------------------------
def _linear_kernel_f32out(x_ref, w_ref, b_ref, y_ref):
    """f32 output: accumulate directly into the resident output tile.

    x_ref: [tm, tk] (any float dtype), w_ref: [tk, tn] (compute dtype, bf16),
    b_ref: [1, tn] f32 (zeros if no bias), y_ref: [tm, tn] f32.
    The x tile is cast to the weight dtype so the MXU sees bf16 x bf16.
    """
    k = pl.program_id(2)
    part = jnp.dot(x_ref[...].astype(w_ref.dtype), w_ref[...],
                   preferred_element_type=jnp.float32)

    @pl.when(k == 0)
    def _():
        # First K step also carries the bias -> no separate zero-init store.
        y_ref[...] = b_ref[...] + part

    @pl.when(k != 0)
    def _():
        y_ref[...] += part


def _linear_kernel_acc(x_ref, w_ref, b_ref, y_ref, acc_ref):
    """Generic output dtype: f32 VMEM accumulator, cast + bias on last K step."""
    k = pl.program_id(2)
    part = jnp.dot(x_ref[...].astype(w_ref.dtype), w_ref[...],
                   preferred_element_type=jnp.float32)

    @pl.when(k == 0)
    def _():
        acc_ref[...] = part            # init with the first dot, no zero-fill

    @pl.when(k != 0)
    def _():
        acc_ref[...] += part

    @pl.when(k == pl.num_programs(2) - 1)
    def _():
        y_ref[...] = (acc_ref[...] + b_ref[...]).astype(y_ref.dtype)


# ---------------------------------------------------------------------------
# Planning / weight preparation (hoisted out of the per-call forward path)
# ---------------------------------------------------------------------------
def plan_linear(din, dout, *, tn=_TN_DEFAULT, tk=_TK_DEFAULT):
    """Pick lane-aligned N/K tiles and padded weight dims (batch-independent,
    so the prepared weight can be cached across forwards)."""
    # With the 512/2048 defaults, tn_e never clamps below 256 when dout >= 256
    # (v6e/v7x 256-wide MXU); 128-multiples are fine on v5e's 128-wide MXU.
    tn_e = min(tn, _round_up(dout, 128))
    tk_e = min(tk, _round_up(din, 128))
    dout_p = _round_up(dout, tn_e)
    din_p = _round_up(din, tk_e)
    return tn_e, tk_e, din_p, dout_p


def prepare_weight(weight_t, bias, din, dout, *, compute_dtype=jnp.bfloat16,
                   tn=_TN_DEFAULT, tk=_TK_DEFAULT):
    """Slice the active window, zero-pad K/N to tile multiples and cast to the
    MXU compute dtype ONCE.  weight_t is stored [max_in, max_out] so the slice
    feeds the MXU as a standard [K, Dout] RHS (no transpose anywhere)."""
    tn_e, tk_e, din_p, dout_p = plan_linear(din, dout, tn=tn, tk=tk)
    w = weight_t[:din, :dout].astype(compute_dtype)
    if (din_p, dout_p) != (din, dout):
        w = jnp.pad(w, ((0, din_p - din), (0, dout_p - dout)))
    if bias is not None:
        b = bias[:dout].astype(jnp.float32)
    else:
        b = jnp.zeros((dout,), jnp.float32)
    if dout_p != dout:
        b = jnp.pad(b, (0, dout_p - dout))
    b = b.reshape(1, dout_p)
    return w, b, tn_e, tk_e, din_p, dout_p


# ---------------------------------------------------------------------------
# Pallas matmul wrapper
# ---------------------------------------------------------------------------
def pallas_linear_prepared(x, w_p, b_p, dout, *, tn_e, tk_e, tm=_TM_DEFAULT):
    """y = x @ w_active + b.

    x:   [n, din] (any float dtype; output comes back in x.dtype)
    w_p: [din_p, dout_p] already padded + cast to the compute dtype
    b_p: [1, dout_p] f32 (zeros row if the module has no bias)
    Returns [n, dout].
    """
    n, din = x.shape
    din_p, dout_p = w_p.shape
    assert din <= din_p and dout <= dout_p

    # ---- M tile -------------------------------------------------------------
    tm_e = min(tm, _round_up(n, 8))
    grid_n = dout_p // tn_e
    # v7x has two TensorCores: guarantee >= 2 "parallel" M x N tiles by halving
    # tm instead of collapsing to one block (harmless on single-TC v5e/v6e).
    if (_round_up(n, tm_e) // tm_e) * grid_n == 1 and n >= 16:
        tm_half = _round_up(-(-n // 2), 8)
        if tm_half < tm_e:
            tm_e = tm_half
    n_p = _round_up(n, tm_e)

    # ---- Pad x only when the M / K tail needs it.  The K zero-padding
    # contributes exactly 0 to the dot (weight K rows are zero-padded too);
    # the M padding is sliced off below.  Fuse the bf16 cast into the copy.
    compute_dtype = w_p.dtype
    x_p = x
    if (n_p, din_p) != (n, din):
        x_p = jnp.pad(x.astype(compute_dtype), ((0, n_p - n), (0, din_p - din)))

    grid = (n_p // tm_e, grid_n, din_p // tk_e)

    x_spec = pl.BlockSpec((tm_e, tk_e), lambda i, j, k: (i, k))
    # Memory-bound regime (tiny M, long K streaming of W): a third W buffer
    # hides DMA latency spikes; cheap since VMEM is mostly idle there.
    if n_p <= 64 and grid[2] >= 3:
        w_spec = pl.BlockSpec((tk_e, tn_e), lambda i, j, k: (k, j),
                              pipeline_mode=pl.Buffered(3))
    else:
        w_spec = pl.BlockSpec((tk_e, tn_e), lambda i, j, k: (k, j))
    b_spec = pl.BlockSpec((1, tn_e), lambda i, j, k: (0, j))
    y_spec = pl.BlockSpec((tm_e, tn_e), lambda i, j, k: (i, j))

    compiler_params = pltpu.CompilerParams(
        dimension_semantics=("parallel", "parallel", "arbitrary"),
        vmem_limit_bytes=_vmem_limit_bytes(),
    )

    out_dtype = x.dtype
    out_shape = jax.ShapeDtypeStruct((n_p, dout_p), out_dtype)

    if out_dtype == jnp.float32:
        kernel = _linear_kernel_f32out      # accumulate straight into y tile
        scratch = []
    else:
        kernel = _linear_kernel_acc         # f32 scratch, cast at the end
        scratch = [pltpu.VMEM((tm_e, tn_e), jnp.float32)]

    y_p = pl.pallas_call(
        kernel,
        out_shape=out_shape,
        grid_spec=pltpu.PrefetchScalarGridSpec(
            num_scalar_prefetch=0,
            grid=grid,
            in_specs=[x_spec, w_spec, b_spec],
            out_specs=y_spec,
            scratch_shapes=scratch,
        ),
        compiler_params=compiler_params,
    )(x_p, w_p, b_p)

    if (n_p, dout_p) != (n, dout):
        y_p = y_p[:n, :dout]
    return y_p


def pallas_linear(x, weight_t, bias=None, *, compute_dtype=jnp.bfloat16,
                  tm=_TM_DEFAULT, tn=_TN_DEFAULT, tk=_TK_DEFAULT):
    """One-shot convenience (prepares the weight on the fly)."""
    din = x.shape[1]
    dout = weight_t.shape[1]
    w_p, b_p, tn_e, tk_e, _, _ = prepare_weight(
        weight_t, bias, din, dout, compute_dtype=compute_dtype, tn=tn, tk=tk)
    return pallas_linear_prepared(x, w_p, b_p, dout, tn_e=tn_e, tk_e=tk_e, tm=tm)


# ---------------------------------------------------------------------------
# Dynamic Linear module (JAX/Pallas port)
# ---------------------------------------------------------------------------
class DynamicLinear:
    """JAX/Pallas port of the dynamic Linear module.

    Master params are f32 (faithful to the torch module); the active slice is
    zero-padded + cast to the bf16 MXU compute dtype once per (in, out)
    configuration and cached, so the per-forward path is a single pallas_call.
    """

    # Below this many MACs the XLA fused matmul wins (launch + pipeline
    # overhead dominates a <10%-utilised MXU).
    _FALLBACK_MACS = 1 << 18

    def __init__(self, max_in_features, max_out_features, bias=True, *,
                 key, compute_dtype=jnp.bfloat16):
        self.max_in_features = max_in_features
        self.max_out_features = max_out_features
        self.bias = bias
        self.compute_dtype = compute_dtype

        # Mimic torch.nn.Linear default init: U(-1/sqrt(fan_in), 1/sqrt(fan_in)).
        kw, kb = jax.random.split(key)
        bound = 1.0 / math.sqrt(max_in_features)
        # Stored transposed ([max_in, max_out]) vs torch's [out, in], so the
        # active slice is a [K, Dout] MXU RHS with no per-call transpose.
        self.weight_t = jax.random.uniform(
            kw, (max_in_features, max_out_features),
            minval=-bound, maxval=bound, dtype=jnp.float32)
        self.bias_param = (
            jax.random.uniform(kb, (max_out_features,),
                               minval=-bound, maxval=bound, dtype=jnp.float32)
            if bias else None)

        self.active_out_features = max_out_features
        self.current_in_features = None
        self.config = {'active_out_features': self.active_out_features}
        self._prep_key = None
        self._prep = None

    def set_active(self, config):
        for k, v in config.items():
            setattr(self, k, v)

    def get_active_weight(self, out_features, in_features):
        # torch layout [out_features, in_features] (reference / inspection only).
        return self.weight_t[:in_features, :out_features].T

    def get_active_bias(self, out_features):
        return self.bias_param[:out_features] if self.bias else None

    def _prepared(self, in_features, out_features):
        key = (in_features, out_features)
        if self._prep_key != key:
            w_p, b_p, tn_e, tk_e, _, _ = prepare_weight(
                self.weight_t, self.bias_param, in_features, out_features,
                compute_dtype=self.compute_dtype)
            self._prep = (w_p, b_p, tn_e, tk_e)
            self._prep_key = key
        return self._prep

    def __call__(self, x, out_features=None, *, force_pallas=False):
        if out_features is None:
            out_features = self.active_out_features
        in_features = x.shape[1]
        self.current_in_features = in_features

        if (not force_pallas
                and x.shape[0] * in_features * out_features < self._FALLBACK_MACS):
            # Tiny problems: launch + pipeline overhead dominates; let XLA fuse.
            w = self.weight_t[:in_features, :out_features].astype(self.compute_dtype)
            y = jnp.dot(x.astype(self.compute_dtype), w,
                        preferred_element_type=jnp.float32)
            if self.bias:
                y = y + self.bias_param[:out_features]
            return y.astype(x.dtype)

        w_p, b_p, tn_e, tk_e = self._prepared(in_features, out_features)
        return pallas_linear_prepared(x, w_p, b_p, out_features,
                                      tn_e=tn_e, tk_e=tk_e)

    # TODO(synk): get_active_module materializes a torch nn.Linear on a device;
    # it is framework glue with no kernel equivalent and is omitted here.


# ---------------------------------------------------------------------------
# Demo / self-check
# ---------------------------------------------------------------------------
if __name__ == "__main__":
    key = jax.random.PRNGKey(0)
    k1, k2, kx1, kx2 = jax.random.split(key, 4)

    def bf16_ref(x, w_t, b):
        # Matches the kernel's numerics: bf16 operands, f32 accumulation.
        y = jnp.dot(x.astype(jnp.bfloat16).astype(jnp.float32),
                    w_t.astype(jnp.bfloat16).astype(jnp.float32),
                    precision=lax.Precision.HIGHEST)
        return y + b if b is not None else y

    # Case 1: small shapes (lane-unaligned active width 24).  Checked once via
    # the XLA tiny-problem fallback (default) and once forcing the Pallas path
    # to exercise padding + the single-block code path.
    max_in, max_out, batch = 32, 48, 8
    mod = DynamicLinear(max_in, max_out, bias=True, key=k1)
    mod.set_active({'active_out_features': 24})
    x = jax.random.normal(kx1, (batch, max_in), dtype=jnp.float32)

    w_t = mod.weight_t[:max_in, :24]
    b = mod.get_active_bias(24)
    y_ref = bf16_ref(x, w_t, b)

    y_fb = jax.block_until_ready(mod(x))                      # XLA fallback
    y_pl = jax.block_until_ready(mod(x, force_pallas=True))   # Pallas path
    assert y_fb.shape == (batch, 24) and y_pl.shape == (batch, 24)
    assert jnp.allclose(y_fb, y_ref, atol=2e-2, rtol=2e-2)
    assert jnp.allclose(y_pl, y_ref, atol=2e-2, rtol=2e-2)

    # Case 2: bigger shapes -> real tiled grid (2 parallel M blocks so a second
    # TensorCore has work, lane-dense 384-wide N tile, bf16 MXU feed, bias
    # folded into the first K step, f32 accumulation in the output tile).
    max_in2, max_out2, batch2 = 1024, 384, 256
    mod2 = DynamicLinear(max_in2, max_out2, bias=True, key=k2)
    mod2.set_active({'active_out_features': 320})
    x2 = jax.random.normal(kx2, (batch2, max_in2), dtype=jnp.float32)
    y2 = jax.block_until_ready(mod2(x2))

    w2_t = mod2.weight_t[:max_in2, :320]
    b2 = mod2.get_active_bias(320)
    y2_ref = bf16_ref(x2, w2_t, b2)
    assert y2.shape == (batch2, 320), y2.shape
    assert jnp.allclose(y2, y2_ref, atol=2e-2, rtol=2e-2)

    print("KERNEL_OK")
</pallas_src>

<mosaic_0001>
module attributes {stable_mosaic.version = 11 : i64} {
  func.func @_linear_kernel_f32out(%arg0: i32, %arg1: i32, %arg2: i32, %arg3: memref<8x128xbf16, #tpu.memory_space<vmem>>, %arg4: memref<128x128xbf16, #tpu.memory_space<vmem>>, %arg5: memref<1x128xf32, #tpu.memory_space<vmem>>, %arg6: memref<8x128xf32, #tpu.memory_space<vmem>>) attributes {dimension_semantics = [#tpu.dimension_semantics<parallel>, #tpu.dimension_semantics<parallel>, #tpu.dimension_semantics<arbitrary>], iteration_bounds = array<i64: 1, 1, 1>, scalar_prefetch = 0 : i64, scratch_operands = 0 : i64, tpu.core_type = #tpu.core_type<tc>, window_params = [{transform_indices = @transform_0, window_bounds = array<i64: 8, 128>}, {transform_indices = @transform_1, window_bounds = array<i64: 128, 128>}, {transform_indices = @transform_2, window_bounds = array<i64: 1, 128>}, {transform_indices = @transform_3, window_bounds = array<i64: 8, 128>}]} {
    %c0 = arith.constant 0 : index
    %c0_0 = arith.constant 0 : index
    %0 = vector.load %arg3[%c0, %c0_0] : memref<8x128xbf16, #tpu.memory_space<vmem>>, vector<8x128xbf16>
    %c0_1 = arith.constant 0 : index
    %c0_2 = arith.constant 0 : index
    %1 = vector.load %arg4[%c0_1, %c0_2] : memref<128x128xbf16, #tpu.memory_space<vmem>>, vector<128x128xbf16>
    %cst = arith.constant dense<0.000000e+00> : vector<8x128xf32>
    %2 = tpu.matmul %0, %1, %cst {dimension_numbers = #tpu.dot_dimension_numbers<[1], [0], [0], [1], [0, 0, 1, 1], [], []>} : vector<8x128xbf16>, vector<128x128xbf16>, vector<8x128xf32> -> vector<8x128xf32>
    %c0_i32 = arith.constant 0 : i32
    %3 = arith.cmpi eq, %arg2, %c0_i32 : i32
    %4 = arith.extui %3 : i1 to i32
    %c0_i32_3 = arith.constant 0 : i32
    %5 = arith.cmpi ne, %4, %c0_i32_3 : i32
    scf.if %5 {
      %c0_6 = arith.constant 0 : index
      %c0_7 = arith.constant 0 : index
      %9 = vector.load %arg5[%c0_6, %c0_7] : memref<1x128xf32, #tpu.memory_space<vmem>>, vector<1x128xf32>
      %10 = vector.broadcast %9 : vector<1x128xf32> to vector<8x128xf32>
      %11 = arith.addf %10, %2 : vector<8x128xf32>
      %c0_8 = arith.constant 0 : index
      %c0_9 = arith.constant 0 : index
      %12 = vector.load %arg6[%c0_8, %c0_9] : memref<8x128xf32, #tpu.memory_space<vmem>>, vector<8x128xf32>
      tpu.vector_store %arg6[%c0_8, %c0_9], %11 {strides = array<i32>} : memref<8x128xf32, #tpu.memory_space<vmem>>, vector<8x128xf32>,
    } else {
    }
    %c0_i32_4 = arith.constant 0 : i32
    %6 = arith.cmpi ne, %arg2, %c0_i32_4 : i32
    %7 = arith.extui %6 : i1 to i32
    %c0_i32_5 = arith.constant 0 : i32
    %8 = arith.cmpi ne, %7, %c0_i32_5 : i32
    scf.if %8 {
      %c0_6 = arith.constant 0 : index
      %c0_7 = arith.constant 0 : index
      %9 = vector.load %arg6[%c0_6, %c0_7] : memref<8x128xf32, #tpu.memory_space<vmem>>, vector<8x128xf32>
      %10 = arith.addf %9, %2 : vector<8x128xf32>
      %c0_8 = arith.constant 0 : index
      %c0_9 = arith.constant 0 : index
      %11 = vector.load %arg6[%c0_8, %c0_9] : memref<8x128xf32, #tpu.memory_space<vmem>>, vector<8x128xf32>
      tpu.vector_store %arg6[%c0_8, %c0_9], %10 {strides = array<i32>} : memref<8x128xf32, #tpu.memory_space<vmem>>, vector<8x128xf32>,
    } else {
    }
    return
  }
  func.func @transform_0(%arg0: i32, %arg1: i32, %arg2: i32) -> (i32, i32) {
    %c0_i32 = arith.constant 0 : i32
    return %arg0, %arg2 : i32, i32
  }
  func.func @transform_1(%arg0: i32, %arg1: i32, %arg2: i32) -> (i32, i32) {
    %c0_i32 = arith.constant 0 : i32
    return %arg2, %arg1 : i32, i32
  }
  func.func @transform_2(%arg0: i32, %arg1: i32, %arg2: i32) -> (i32, i32) {
    %c0_i32 = arith.constant 0 : i32
    %c0_i32_0 = arith.constant 0 : i32
    return %c0_i32, %arg1 : i32, i32
  }
  func.func @transform_3(%arg0: i32, %arg1: i32, %arg2: i32) -> (i32, i32) {
    %c0_i32 = arith.constant 0 : i32
    return %arg0, %arg1 : i32, i32
  }
}

</mosaic_0001>

<bundles_post_ra>
// kernel: tpu_custom_call.1
= control target key start
LH: loop header
LB: loop body
LE: loop exit
PB: predicated region body
PF: predicated region fallthrough
CT: control target
= control target key end

     0   :  { %8 = vsyncpa [#allocation3], 0  ;;  %s381_s0 = inlined_call_operand.hbm [shape: bf16[8,128], index: 0, kind: input, shape index: {}]   ;;  %s382_s1 = inlined_call_operand.hbm [shape: bf16[128,128], index: 1, kind: input, shape index: {}]   ;;  %s383_s2 = inlined_call_operand.vmem [shape: f32[1,128], index: 2, kind: input, shape index: {}]   ;;  %s384_s3 = inlined_call_operand.hbm [shape: f32[8,128], index: 3, kind: output, shape index: {}]  }
   0x1   :  { %9 = vsyncpa [#allocation6], 0 }
   0x2   :  { %10 = vsyncpa [#allocation4], 0  ;;  %s308_s12 = smov [#allocation2]   ;;  %s309_s14 = smov [#allocation5]  }
   0x3   :  { %s17_s13 = sshll.u32 %s308_s12, 4  ;;  %s26_s15 = sshll.u32 %s309_s14, 4  ;;  %s18_s13 = int_to_ptr.vmem [resolvable:$true] %s17_s13  ;;  %s335_s15 = int_to_ptr.vmem [resolvable:$true] %s26_s15 }
   0x4   :  { %s236_s18 = scalar_lea.hbm %s381_s0, 64 }
   0x5   :  { %p237_p0 = scmp.ne.s32.totalorder %s381_s0, %s236_s18  ;;  %p240_p1 = scmp.lt.u32.totalorder %s236_s18, %s381_s0 }
   0x7   :  { %p242_p2 = pnand %p240_p1, %p237_p0 }
   0x9   :  { %245 = shalt.err (!%p242_p2)
}
   0xa   :  { %s246_s23 = scalar_lea.vmem %s18_s13, 64  ;;  %p251_p4 = scmp.lt.s32.totalorder %s18_s13, %s18_s13 }
   0xb   :  { %p247_p3 = scmp.ne.s32.totalorder %s18_s13, %s246_s23  ;;  %p252_p5 = scmp.lt.s32.totalorder %s246_s23, %s246_s23 }
   0xd   :  { %p253_p6 = por %p252_p5, %p251_p4 }
   0xf   :  { %p254_p7 = pnand %p253_p6, %p247_p3 }
  0x11   :  { %257 = shalt.err (!%p254_p7)
}
  0x12   :  { %20 = dma.hbm_to_vmem [thread:$0]  %s381_s0, 64, %s18_s13, [#allocation3]  }
  0x13   :  { %s258_s28 = scalar_lea.hbm %s382_s1, 1024 }
  0x14   :  { %p259_p8 = scmp.ne.s32.totalorder %s382_s1, %s258_s28  ;;  %p262_p9 = scmp.lt.u32.totalorder %s258_s28, %s382_s1 }
  0x16   :  { %p264_p10 = pnand %p262_p9, %p259_p8 }
  0x18   :  { %267 = shalt.err (!%p264_p10)
}
  0x19   :  { %s268_s6 = scalar_lea.vmem %s335_s15, 1024  ;;  %p273_p12 = scmp.lt.s32.totalorder %s335_s15, %s335_s15 }
  0x1a   :  { %p269_p11 = scmp.ne.s32.totalorder %s335_s15, %s268_s6  ;;  %p274_p13 = scmp.lt.s32.totalorder %s268_s6, %s268_s6 }
  0x1c   :  { %p275_p0 = por %p274_p13, %p273_p12 }
  0x1e   :  { %p276_p1 = pnand %p275_p0, %p269_p11 }
  0x20   :  { %279 = shalt.err (!%p276_p1)
}
  0x21   :  { %s310_s0 = smov 64   ;;  %s311_s7 = smov 4  }
  0x22   :  { %32 = dma.hbm_to_vmem [thread:$0]  %s382_s1, 1024, %s335_s15, [#allocation6], %s310_s0, %s310_s0, %s311_s7  }
  0x23   :  { %302 = dma.done.wait [#allocation3], 64  }
  0x24   :  { %303 = vsyncadd [#allocation3], 4294967232 }
  0x25   :  { %304 = dma.done.wait [#allocation6], 1024  }
  0x26   :  { %305 = vsyncadd [#allocation6], 4294966272  ;;  %v312_v0 = vmov 0.0   ;;  %vm313_vm0 = vmmov 0   ;;  %v228_v1 = vld [vmem:[#allocation5] sm:$0xff]   ;;  %v229_v2 = vld [vmem:[#allocation5 + $0x8] sm:$0xff]  }
  0x27   :  { %201 = vmatprep.subr.bf16.mxu0 %v312_v0  ;;  %217 = vmatprep.mubr.msk.bf16.mxu0 %vm313_vm0, %v312_v0  ;;  %v230_v3 = vld [vmem:[#allocation5 + $0x10] sm:$0xff]   ;;  %v231_v4 = vld [vmem:[#allocation5 + $0x18] sm:$0xff]   ;;  %v232_v5 = vld [vmem:[#allocation5 + $0x20] sm:$0xff]   ;;  %s314_s11 = smov [#allocation7]  }
  0x28   :  { %202 = vmatpush3.bf16.msra.mxu0 %v228_v1  ;;  %v233_v6 = vld [vmem:[#allocation5 + $0x28] sm:$0xff]   ;;  %v234_v7 = vld [vmem:[#allocation5 + $0x30] sm:$0xff]   ;;  %v235_v8 = vld [vmem:[#allocation5 + $0x38] sm:$0xff]   ;;  %s173_s12 = sshll.u32 %s314_s11, 4  ;;  %s174_s12 = int_to_ptr.vmem [resolvable:$true] %s173_s12 }
  0x29   :  { %203 = vmatprep.subr.bf16.mxu0 %v312_v0  ;;  %v42_v9 = vld [vmem:[#allocation2] sm:$0xf]  ;;  %s280_s13 = scalar_lea.vmem %s174_s12, 128  ;;  %p285_p3 = scmp.lt.s32.totalorder %s174_s12, %s174_s12 }
  0x2a   :  { %v191_v10 = vld [vmem:[%s383_s2] ss:$0 sm:$0xff]  ;;  %p281_p2 = scmp.ne.s32.totalorder %s174_s12, %s280_s13  ;;  %p286_p4 = scmp.lt.s32.totalorder %s280_s13, %s280_s13 }
  0x2c   :  { %204 = vmatpush3.bf16.msra.mxu0 %v229_v2  ;;  %p287_p5 = por %p286_p4, %p285_p3 }
  0x2d   :  { %205 = vmatprep.subr.bf16.mxu0 %v312_v0 }
  0x2e   :  { %p288_p6 = pnand %p287_p5, %p281_p2 }
  0x30   :  { %206 = vmatpush3.bf16.msra.mxu0 %v230_v3 }
  0x31   :  { %207 = vmatprep.subr.bf16.mxu0 %v312_v0 }
  0x34   :  { %208 = vmatpush3.bf16.msra.mxu0 %v231_v4 }
  0x35   :  { %209 = vmatprep.subr.bf16.mxu0 %v312_v0 }
  0x38   :  { %210 = vmatpush3.bf16.msra.mxu0 %v232_v5 }
  0x39   :  { %211 = vmatprep.subr.bf16.mxu0 %v312_v0 }
  0x3c   :  { %212 = vmatpush3.bf16.msra.mxu0 %v233_v6 }
  0x3d   :  { %213 = vmatprep.subr.bf16.mxu0 %v312_v0 }
  0x40   :  { %214 = vmatpush3.bf16.msra.mxu0 %v234_v7 }
  0x41   :  { %215 = vmatprep.subr.bf16.mxu0 %v312_v0 }
  0x44   :  { %216 = vmatpush3.bf16.msra.mxu0 %v235_v8 }
  0x47   :  { %218 = vmatmul.mubr.bf16.vlgmr.msra.gmra.mrb[0].mxu0 %v42_v9 }
 0x11a   :  { %v141_v11 = vpop.f32.mrb[0].mxu0 }
 0x11b   :  { %v158_v12 = vadd.f32 %v191_v10, %v141_v11  ;;  %v219_v13 = vpop.f32.mrb[1].mxu0 }
 0x11c   :  { %v144_v14 = vpop.f32.mrb[2].mxu0 }
 0x11d   :  { %159 = vst [vmem:[#allocation7] sm:$0xff] %v158_v12  ;;  %v220_v15 = vpop.f32.mrb[3].mxu0 }
 0x11e   :  { %291 = shalt.err (!%p288_p6)
}
 0x11f   :  { %s292_s2 = scalar_lea.hbm %s384_s3, 128 }
 0x120   :  { %p293_p7 = scmp.ne.s32.totalorder %s384_s3, %s292_s2  ;;  %p296_p8 = scmp.lt.u32.totalorder %s292_s2, %s384_s3 }
 0x122   :  { %p298_p9 = pnand %p296_p8, %p293_p7 }
 0x124   :  { %301 = shalt.err (!%p298_p9)
}
 0x125   :  { %176 = dma.vmem_to_hbm [thread:$0]  %s174_s12, 128, %s384_s3, [#allocation4]  }
 0x126   :  { %306 = dma.done.wait [#allocation4], 128  }
 0x127   :  { %307 = vsyncadd [#allocation4], 4294967168 }
 0x128   :  { %180 = vsyncpa [#allocation3], 1 }
 0x129   :  { %181 = vsyncpa [#allocation6], 1 }
 0x12a   :  { %182 = vsyncpa [#allocation4], 1 }

</bundles_post_ra>
